<compile_context>
chip_gen: v7x
topology: tpu7x:2x2x1
jax: 0.10.0
libtpu: 0.0.40
codegen_flags: <defaults>
</compile_context>

<pallas_src>
import jax
import jax.numpy as jnp
from jax.experimental import pallas as pl
from jax.experimental.pallas import tpu as pltpu


_PAD = 256          # pad the node dimension to a multiple of this
_TILE_PREF = 512    # preferred matmul tile (clamped to divide the padded dim)


def _round_up(x, m):
    return (x + m - 1) // m * m


def _tile(dim, pref=_TILE_PREF):
    """Largest tile <= pref that divides dim (dim is a multiple of _PAD)."""
    if dim <= pref:
        return dim
    t = pref
    while t > 128 and dim % t != 0:
        t //= 2
    assert dim % t == 0, (dim, t)
    return t


# ---------------------------------------------------------------------------
# Kernel 1 (first layer):  H = scale * (X @ Y), plus per-j-block partial row
# sums of H (fused degree computation for the next layer's normalization).
# ---------------------------------------------------------------------------
def _mm_rowsum_kernel(scale_ref, x_ref, y_ref, o_ref, d_ref, acc_ref):
    k = pl.program_id(2)
    p = jnp.dot(x_ref[...], y_ref[...], preferred_element_type=jnp.float32)

    @pl.when(k == 0)
    def _():
        acc_ref[...] = p

    @pl.when(k != 0)
    def _():
        acc_ref[...] += p

    @pl.when(k == pl.num_programs(2) - 1)
    def _():
        h = acc_ref[...] * scale_ref[0]
        o_ref[...] = h.astype(o_ref.dtype)
        d_ref[...] = jnp.sum(h, axis=1, keepdims=True)


def matmul_rowsum(x, y, scale, *, out_dtype=jnp.bfloat16, tile=_TILE_PREF):
    M, K = x.shape
    K2, N = y.shape
    assert K == K2
    tm, tn, tk = _tile(M, tile), _tile(N, tile), _tile(K, tile)
    gj = N // tn
    scale_arr = jnp.reshape(jnp.asarray(scale, jnp.float32), (1,))
    return pl.pallas_call(
        _mm_rowsum_kernel,
        out_shape=(
            jax.ShapeDtypeStruct((M, N), out_dtype),
            jax.ShapeDtypeStruct((gj, M, 1), jnp.float32),   # per-j partial degrees
        ),
        grid_spec=pltpu.PrefetchScalarGridSpec(
            num_scalar_prefetch=0,
            grid=(M // tm, gj, K // tk),
            in_specs=[
                pl.BlockSpec(memory_space=pltpu.MemorySpace.SMEM),     # scale
                pl.BlockSpec((tm, tk), lambda i, j, k: (i, k)),
                pl.BlockSpec((tk, tn), lambda i, j, k: (k, j)),
            ],
            out_specs=[
                pl.BlockSpec((tm, tn), lambda i, j, k: (i, j)),
                pl.BlockSpec((None, tm, 1), lambda i, j, k: (j, i, 0)),
            ],
            scratch_shapes=[pltpu.VMEM((tm, tn), jnp.float32)],
        ),
        compiler_params=pltpu.CompilerParams(
            dimension_semantics=("parallel", "parallel", "arbitrary"),
            vmem_limit_bytes=32 * 1024 * 1024,
        ),
    )(scale_arr, x, y)


# ---------------------------------------------------------------------------
# Kernel 2 (non-first layers):
#   H_next = c * ( D^-1/2 (H + I) D^-1/2 ) @ A
# LHS normalization is applied elementwise to the bf16 H tile right before
# the MXU dot (scale c folded into the row factor).  The identity term is
# added exactly as (c * dinv_i^2) * A[row-block i, :] on the single k == i
# block (requires tm == tk).  Row sums of H_next are fused into the epilogue.
# ---------------------------------------------------------------------------
def _norm_mm_rowsum_kernel(dr_ref, dc_ref, d2_ref, h_ref, a_ref,
                           o_ref, d_ref, acc_ref):
    i = pl.program_id(0)
    k = pl.program_id(2)

    lhs = (h_ref[...].astype(jnp.float32) * dr_ref[...] * dc_ref[...]
           ).astype(jnp.bfloat16)
    p = jnp.dot(lhs, a_ref[...], preferred_element_type=jnp.float32)

    @pl.when(k == 0)
    def _():
        acc_ref[...] = p

    @pl.when(k != 0)
    def _():
        acc_ref[...] += p

    # Identity contribution of (H + I): only the k block whose A rows coincide
    # with this output-row block (tm == tk, so k == i) sees it.
    @pl.when(k == i)
    def _():
        acc_ref[...] += d2_ref[...] * a_ref[...].astype(jnp.float32)

    @pl.when(k == pl.num_programs(2) - 1)
    def _():
        h = acc_ref[...]
        o_ref[...] = h.astype(o_ref.dtype)
        d_ref[...] = jnp.sum(h, axis=1, keepdims=True)


def norm_matmul_rowsum(h, a, dinv, scale, *, out_dtype=jnp.bfloat16,
                       tile=_TILE_PREF):
    M, K = h.shape
    K2, N = a.shape
    assert K == K2 and M == K
    tm, tn, tk = _tile(M, tile), _tile(N, tile), _tile(K, tile)
    assert tm == tk, "fused identity term requires tm == tk"
    gj = N // tn

    dinv = jnp.reshape(dinv, (M, 1)).astype(jnp.float32)
    scale = jnp.asarray(scale, jnp.float32)
    dr = scale * dinv                # GTConv scale folded into the row factor
    dc = jnp.reshape(dinv, (1, K))
    d2 = scale * dinv * dinv         # scaled identity diagonal

    return pl.pallas_call(
        _norm_mm_rowsum_kernel,
        out_shape=(
            jax.ShapeDtypeStruct((M, N), out_dtype),
            jax.ShapeDtypeStruct((gj, M, 1), jnp.float32),
        ),
        grid_spec=pltpu.PrefetchScalarGridSpec(
            num_scalar_prefetch=0,
            grid=(M // tm, gj, K // tk),
            in_specs=[
                pl.BlockSpec((tm, 1), lambda i, j, k: (i, 0)),   # c * dinv (rows)
                pl.BlockSpec((1, tk), lambda i, j, k: (0, k)),   # dinv (cols)
                pl.BlockSpec((tm, 1), lambda i, j, k: (i, 0)),   # c * dinv^2
                pl.BlockSpec((tm, tk), lambda i, j, k: (i, k)),  # H (bf16)
                pl.BlockSpec((tk, tn), lambda i, j, k: (k, j)),  # A (bf16)
            ],
            out_specs=[
                pl.BlockSpec((tm, tn), lambda i, j, k: (i, j)),
                pl.BlockSpec((None, tm, 1), lambda i, j, k: (j, i, 0)),
            ],
            scratch_shapes=[pltpu.VMEM((tm, tn), jnp.float32)],
        ),
        compiler_params=pltpu.CompilerParams(
            dimension_semantics=("parallel", "parallel", "arbitrary"),
            vmem_limit_bytes=32 * 1024 * 1024,
        ),
    )(dr, dc, d2, h, a)


# ---------------------------------------------------------------------------
# GTN forward (matmuls / reductions in Pallas, scalar glue in plain JAX)
# ---------------------------------------------------------------------------
def gtconv_coef(w):
    # sum over dim 0 of softmax(w, dim=1); softmax over a size-1 dim == ones,
    # so GTConv collapses to multiplying A by this scalar.
    return jnp.sum(jax.nn.softmax(w, axis=1))


def gtn_forward(A, layer_weights):
    """A: (N, N) float32.  Returns H of shape (1, N, N) float32 (torch layout)."""
    N = A.shape[-1]
    Np = _round_up(N, _PAD)                     # hardened tiling: pad, never fall
    A_bf = A.astype(jnp.bfloat16)               # back to a monolithic block
    if Np != N:
        A_bf = jnp.pad(A_bf, ((0, Np - N), (0, Np - N)))

    num_layers = len(layer_weights)
    H = None
    dpart = None
    for li, ws in enumerate(layer_weights):
        out_dtype = jnp.float32 if li == num_layers - 1 else jnp.bfloat16
        if li == 0:
            c = gtconv_coef(ws[0]) * gtconv_coef(ws[1])
            H, dpart = matmul_rowsum(A_bf, A_bf, c, out_dtype=out_dtype)
        else:
            d = jnp.sum(dpart, axis=0)          # (Np, 1) row sums of previous H
            dinv = jax.lax.rsqrt(d + 1.0)       # D^-1/2 of (H + I); tiny glue
            c = gtconv_coef(ws[0])
            H, dpart = norm_matmul_rowsum(H, A_bf, dinv, c, out_dtype=out_dtype)

    H = H[:N, :N].astype(jnp.float32)
    return H[None]                              # (1, N, N)


# ---------------------------------------------------------------------------
# Pure-JAX f32 reference (mirrors the torch code literally)
# ---------------------------------------------------------------------------
def _norm_ref(H):
    Hn = H + jnp.eye(H.shape[0], dtype=H.dtype)
    D = jnp.sum(Hn, axis=1)
    Dm = jnp.diag(D ** -0.5)
    hi = jax.lax.Precision.HIGHEST
    return jnp.matmul(jnp.matmul(Dm, Hn, precision=hi), Dm, precision=hi)


def gtn_reference(A, layer_weights):
    hi = jax.lax.Precision.HIGHEST
    A4 = A[None]

    def conv(w):
        s = jax.nn.softmax(w, axis=1)           # (2,1,1,1)
        return jnp.sum(A4 * s, axis=0)          # (1, N, N)

    H = None
    for i, ws in enumerate(layer_weights):
        if i == 0:
            a, b = conv(ws[0]), conv(ws[1])
            H = jnp.matmul(a, b, precision=hi)
        else:
            H_ = _norm_ref(H[0])[None]
            a = conv(ws[0])
            H = jnp.matmul(H_, a, precision=hi)
    return H


def _check(A, layer_weights, tag):
    out = jax.block_until_ready(gtn_forward(A, layer_weights))
    ref = gtn_reference(A, layer_weights)
    assert out.shape == ref.shape
    max_err = float(jnp.max(jnp.abs(out - ref)))
    rel = max_err / (float(jnp.max(jnp.abs(ref))) + 1e-6)
    if rel > 1e-2:
        raise AssertionError(f"[{tag}] Pallas/reference mismatch: rel_err={rel}")


# ---------------------------------------------------------------------------
if __name__ == "__main__":
    key = jax.random.PRNGKey(0)
    num_layers = 2

    k_a, k_a2, k_w = jax.random.split(key, 3)

    # GTConv weights: nn.init.normal_ on shape (2, 1, 1, 1)
    wkeys = jax.random.split(k_w, num_layers + 1)
    layer_weights = [
        (
            jax.random.normal(wkeys[0], (2, 1, 1, 1), jnp.float32),
            jax.random.normal(wkeys[1], (2, 1, 1, 1), jnp.float32),
        )
    ]
    for i in range(1, num_layers):
        layer_weights.append(
            (jax.random.normal(wkeys[i + 1], (2, 1, 1, 1), jnp.float32),)
        )

    # Nonnegative adjacency (keeps D^-1/2 finite, as with real association graphs).
    A256 = jax.random.uniform(k_a, (256, 256), dtype=jnp.float32)
    _check(A256, layer_weights, "N=256")

    # Non-multiple-of-256 size exercises the padding path (same padded shapes,
    # so the compiled kernels are reused).
    A200 = jax.random.uniform(k_a2, (200, 200), dtype=jnp.float32)
    _check(A200, layer_weights, "N=200")

    print("KERNEL_OK")
</pallas_src>

<mosaic_0001>
module attributes {stable_mosaic.version = 11 : i64} {
  func.func @_mm_rowsum_kernel(%arg0: i32, %arg1: i32, %arg2: i32, %arg3: memref<1xf32, #tpu.memory_space<smem>>, %arg4: memref<256x256xbf16, #tpu.memory_space<vmem>>, %arg5: memref<256x256xbf16, #tpu.memory_space<vmem>>, %arg6: memref<256x256xbf16, #tpu.memory_space<vmem>>, %arg7: memref<1x256x1xf32, #tpu.memory_space<vmem>>, %arg8: memref<256x256xf32, #tpu.memory_space<vmem>>) attributes {dimension_semantics = [#tpu.dimension_semantics<parallel>, #tpu.dimension_semantics<parallel>, #tpu.dimension_semantics<arbitrary>], iteration_bounds = array<i64: 1, 1, 1>, scalar_prefetch = 0 : i64, scratch_operands = 1 : i64, tpu.core_type = #tpu.core_type<tc>, window_params = [{transform_indices = @transform_0, window_bounds = array<i64: 1>}, {transform_indices = @transform_1, window_bounds = array<i64: 256, 256>}, {transform_indices = @transform_2, window_bounds = array<i64: 256, 256>}, {transform_indices = @transform_3, window_bounds = array<i64: 256, 256>}, {transform_indices = @transform_4, window_bounds = array<i64: 1, 256, 1>}]} {
    %c0 = arith.constant 0 : index
    %c0_0 = arith.constant 0 : index
    %0 = vector.load %arg4[%c0, %c0_0] : memref<256x256xbf16, #tpu.memory_space<vmem>>, vector<256x256xbf16>
    %c0_1 = arith.constant 0 : index
    %c0_2 = arith.constant 0 : index
    %1 = vector.load %arg5[%c0_1, %c0_2] : memref<256x256xbf16, #tpu.memory_space<vmem>>, vector<256x256xbf16>
    %cst = arith.constant dense<0.000000e+00> : vector<256x256xf32>
    %2 = tpu.matmul %0, %1, %cst {dimension_numbers = #tpu.dot_dimension_numbers<[1], [0], [0], [1], [0, 0, 1, 1], [], []>} : vector<256x256xbf16>, vector<256x256xbf16>, vector<256x256xf32> -> vector<256x256xf32>
    %c0_i32 = arith.constant 0 : i32
    %3 = arith.cmpi eq, %arg2, %c0_i32 : i32
    %4 = arith.extui %3 : i1 to i32
    %c0_i32_3 = arith.constant 0 : i32
    %5 = arith.cmpi ne, %4, %c0_i32_3 : i32
    scf.if %5 {
      %c0_8 = arith.constant 0 : index
      %c0_9 = arith.constant 0 : index
      %12 = vector.load %arg8[%c0_8, %c0_9] : memref<256x256xf32, #tpu.memory_space<vmem>>, vector<256x256xf32>
      tpu.vector_store %arg8[%c0_8, %c0_9], %2 {strides = array<i32>} : memref<256x256xf32, #tpu.memory_space<vmem>>, vector<256x256xf32>,
    } else {
    }
    %c0_i32_4 = arith.constant 0 : i32
    %6 = arith.cmpi ne, %arg2, %c0_i32_4 : i32
    %7 = arith.extui %6 : i1 to i32
    %c0_i32_5 = arith.constant 0 : i32
    %8 = arith.cmpi ne, %7, %c0_i32_5 : i32
    scf.if %8 {
      %c0_8 = arith.constant 0 : index
      %c0_9 = arith.constant 0 : index
      %12 = vector.load %arg8[%c0_8, %c0_9] : memref<256x256xf32, #tpu.memory_space<vmem>>, vector<256x256xf32>
      %13 = arith.addf %12, %2 : vector<256x256xf32>
      %c0_10 = arith.constant 0 : index
      %c0_11 = arith.constant 0 : index
      %14 = vector.load %arg8[%c0_10, %c0_11] : memref<256x256xf32, #tpu.memory_space<vmem>>, vector<256x256xf32>
      tpu.vector_store %arg8[%c0_10, %c0_11], %13 {strides = array<i32>} : memref<256x256xf32, #tpu.memory_space<vmem>>, vector<256x256xf32>,
    } else {
    }
    %c0_i32_6 = arith.constant 0 : i32
    %9 = arith.cmpi eq, %arg2, %c0_i32_6 : i32
    %10 = arith.extui %9 : i1 to i32
    %c0_i32_7 = arith.constant 0 : i32
    %11 = arith.cmpi ne, %10, %c0_i32_7 : i32
    scf.if %11 {
      %c0_8 = arith.constant 0 : index
      %c0_9 = arith.constant 0 : index
      %12 = vector.load %arg8[%c0_8, %c0_9] : memref<256x256xf32, #tpu.memory_space<vmem>>, vector<256x256xf32>
      %c0_10 = arith.constant 0 : index
      %13 = memref.load %arg3[%c0_10] : memref<1xf32, #tpu.memory_space<smem>>
      %14 = vector.broadcast %13 : f32 to vector<256x256xf32>
      %15 = arith.mulf %12, %14 : vector<256x256xf32>
      %16 = arith.truncf %15 : vector<256x256xf32> to vector<256x256xbf16>
      %c0_11 = arith.constant 0 : index
      %c0_12 = arith.constant 0 : index
      %17 = vector.load %arg6[%c0_11, %c0_12] : memref<256x256xbf16, #tpu.memory_space<vmem>>, vector<256x256xbf16>
      tpu.vector_store %arg6[%c0_11, %c0_12], %16 {strides = array<i32>} : memref<256x256xbf16, #tpu.memory_space<vmem>>, vector<256x256xbf16>,
      %cst_13 = arith.constant dense<0.000000e+00> : vector<256xf32>
      %18 = vector.multi_reduction <add>, %15, %cst_13 [1] : vector<256x256xf32> to vector<256xf32>
      %19 = vector.shape_cast %18 : vector<256xf32> to vector<256x1xf32>
      %c0_14 = arith.constant 0 : index
      %c0_15 = arith.constant 0 : index
      %c0_16 = arith.constant 0 : index
      %20 = vector.load %arg7[%c0_14, %c0_15, %c0_16] : memref<1x256x1xf32, #tpu.memory_space<vmem>>, vector<1x256x1xf32>
      %21 = vector.shape_cast %20 : vector<1x256x1xf32> to vector<256x1xf32>
      %22 = vector.shape_cast %19 : vector<256x1xf32> to vector<1x256x1xf32>
      tpu.vector_store %arg7[%c0_14, %c0_15, %c0_16], %22 {strides = array<i32>} : memref<1x256x1xf32, #tpu.memory_space<vmem>>, vector<1x256x1xf32>,
    } else {
    }
    return
  }
  func.func @transform_0(%arg0: i32, %arg1: i32, %arg2: i32) -> i32 {
    %c0_i32 = arith.constant 0 : i32
    %c0_i32_0 = arith.constant 0 : i32
    return %c0_i32 : i32
  }
  func.func @transform_1(%arg0: i32, %arg1: i32, %arg2: i32) -> (i32, i32) {
    %c0_i32 = arith.constant 0 : i32
    return %arg0, %arg2 : i32, i32
  }
  func.func @transform_2(%arg0: i32, %arg1: i32, %arg2: i32) -> (i32, i32) {
    %c0_i32 = arith.constant 0 : i32
    return %arg2, %arg1 : i32, i32
  }
  func.func @transform_3(%arg0: i32, %arg1: i32, %arg2: i32) -> (i32, i32) {
    %c0_i32 = arith.constant 0 : i32
    return %arg0, %arg1 : i32, i32
  }
  func.func @transform_4(%arg0: i32, %arg1: i32, %arg2: i32) -> (i32, i32, i32) {
    %c0_i32 = arith.constant 0 : i32
    %c0_i32_0 = arith.constant 0 : i32
    return %arg1, %arg0, %c0_i32 : i32, i32, i32
  }
}

</mosaic_0001>

<bundles_post_ra>
// kernel: tpu_custom_call.1
= control target key start
LH: loop header
LB: loop body
LE: loop exit
PB: predicated region body
PF: predicated region fallthrough
CT: control target
= control target key end

     0   :  { %11 = vsyncpa [#allocation5], 0  ;;  %s2000_s0 = inlined_call_operand.<no memory space> [shape: f32[1], index: 0, kind: input, shape index: {}]   ;;  %s2001_s1 = inlined_call_operand.hbm [shape: bf16[256,256], index: 1, kind: input, shape index: {}]   ;;  %s2002_s2 = inlined_call_operand.hbm [shape: bf16[256,256], index: 2, kind: input, shape index: {}]   ;;  %s2003_s3 = inlined_call_operand.hbm [shape: bf16[256,256], index: 3, kind: output, shape index: {0}]   ;;  %s2004_s4 = inlined_call_operand.vmem [shape: f32[1,256,1], index: 4, kind: output, shape index: {1}]  }
   0x1   :  { %12 = vsyncpa [#allocation8], 0 }
   0x2   :  { %13 = vsyncpa [#allocation6], 0  ;;  %s1728_s15 = smov [#allocation4]   ;;  %s1656_s19 = scalar_lea.hbm %s2001_s1, 4096 }
   0x3   :  { %s21_s16 = sshll.u32 %s1728_s15, 4  ;;  %p1657_p0 = scmp.ne.s32.totalorder %s2001_s1, %s1656_s19  ;;  %s22_s16 = int_to_ptr.vmem [resolvable:$true] %s21_s16 }
   0x4   :  { %p1660_p1 = scmp.lt.u32.totalorder %s1656_s19, %s2001_s1 }
   0x6   :  { %p1662_p2 = pnand %p1660_p1, %p1657_p0 }
   0x8   :  { %1665 = shalt.err (!%p1662_p2)
}
   0x9   :  { %s1666_s24 = scalar_lea.vmem %s22_s16, 4096  ;;  %p1671_p4 = scmp.lt.s32.totalorder %s22_s16, %s22_s16 }
   0xa   :  { %p1667_p3 = scmp.ne.s32.totalorder %s22_s16, %s1666_s24  ;;  %p1672_p5 = scmp.lt.s32.totalorder %s1666_s24, %s1666_s24 }
   0xc   :  { %p1673_p6 = por %p1672_p5, %p1671_p4 }
   0xe   :  { %p1674_p7 = pnand %p1673_p6, %p1667_p3 }
  0x10   :  { %1677 = shalt.err (!%p1674_p7)
}
  0x11   :  { %s1729_s25 = smov 128   ;;  %s1730_s26 = smov 8  }
  0x12   :  { %27 = dma.hbm_to_vmem [thread:$0]  %s2001_s1, 4096, %s22_s16, [#allocation5], %s1729_s25, %s1729_s25, %s1730_s26  }
  0x13   :  { %s1731_s29 = smov [#allocation7]   ;;  %s1678_s7 = scalar_lea.hbm %s2002_s2, 4096 }
  0x14   :  { %s33_s30 = sshll.u32 %s1731_s29, 4  ;;  %p1679_p8 = scmp.ne.s32.totalorder %s2002_s2, %s1678_s7  ;;  %s34_s30 = int_to_ptr.vmem [resolvable:$true] %s33_s30 }
  0x15   :  { %p1682_p9 = scmp.lt.u32.totalorder %s1678_s7, %s2002_s2 }
  0x17   :  { %p1684_p10 = pnand %p1682_p9, %p1679_p8 }
  0x19   :  { %1687 = shalt.err (!%p1684_p10)
}
  0x1a   :  { %s1688_s12 = scalar_lea.vmem %s34_s30, 4096  ;;  %p1693_p12 = scmp.lt.s32.totalorder %s34_s30, %s34_s30 }
  0x1b   :  { %p1689_p11 = scmp.ne.s32.totalorder %s34_s30, %s1688_s12  ;;  %p1694_p13 = scmp.lt.s32.totalorder %s1688_s12, %s1688_s12 }
  0x1d   :  { %p1695_p0 = por %p1694_p13, %p1693_p12 }
  0x1f   :  { %p1696_p1 = pnand %p1695_p0, %p1689_p11 }
  0x21   :  { %1699 = shalt.err (!%p1696_p1)
}
  0x22   :  { %39 = dma.hbm_to_vmem [thread:$0]  %s2002_s2, 4096, %s34_s30, [#allocation8], %s1729_s25, %s1729_s25, %s1730_s26  }
  0x23   :  { %1722 = dma.done.wait [#allocation5], 4096  }
  0x24   :  { %1723 = vsyncadd [#allocation5], 4294963200 }
  0x25   :  { %1724 = dma.done.wait [#allocation8], 4096  }
  0x26   :  { %1725 = vsyncadd [#allocation8], 4294963200  ;;  %v1560_v0 = vld [vmem:[#allocation7 + $0x4] ss:$8 sps:$4 sm:$0xff]   ;;  %v1562_v1 = vld [vmem:[#allocation7] ss:$8 sps:$4 sm:$0xff]  }
  0x27   :  { %430 = vmatprep.subr.bf16.mxu0 %v1560_v0  ;;  %1523 = vmatprep.subr.bf16.mxu1 %v1560_v0  ;;  %v1563_v2 = vld [vmem:[#allocation7 + $0x14] ss:$8 sps:$4 sm:$0xff]   ;;  %v1565_v3 = vld [vmem:[#allocation7 + $0x10] ss:$8 sps:$4 sm:$0xff]   ;;  %v1566_v4 = vld [vmem:[#allocation7 + $0x24] ss:$8 sps:$4 sm:$0xff]   ;;  %v1791_v0 = vstv %s2000_s0 }
  0x28   :  { %431 = vmatpush1.bf16.msra.mxu0 %v1562_v1  ;;  %1539 = vmatpush1.bf16.msra.mxu1 %v1562_v1  ;;  %v1568_v5 = vld [vmem:[#allocation7 + $0x20] ss:$8 sps:$4 sm:$0xff]   ;;  %v1569_v6 = vld [vmem:[#allocation7 + $0x34] ss:$8 sps:$4 sm:$0xff]   ;;  %v1571_v7 = vld [vmem:[#allocation7 + $0x30] ss:$8 sps:$4 sm:$0xff]  }
  0x29   :  { %432 = vmatprep.subr.bf16.mxu0 %v1563_v2  ;;  %1524 = vmatprep.subr.bf16.mxu1 %v1563_v2  ;;  %v1572_v8 = vld [vmem:[#allocation7 + $0x44] ss:$8 sps:$4 sm:$0xff]   ;;  %v1574_v9 = vld [vmem:[#allocation7 + $0x40] ss:$8 sps:$4 sm:$0xff]   ;;  %v1575_v10 = vld [vmem:[#allocation7 + $0x54] ss:$8 sps:$4 sm:$0xff]  }
  0x2a   :  { %v1577_v11 = vld [vmem:[#allocation7 + $0x50] ss:$8 sps:$4 sm:$0xff]   ;;  %v1578_v12 = vld [vmem:[#allocation7 + $0x64] ss:$8 sps:$4 sm:$0xff]   ;;  %v1580_v14 = vld [vmem:[#allocation7 + $0x60] ss:$8 sps:$4 sm:$0xff]  }
  0x2b   :  { %v1610_v13 = vld [vmem:[#allocation4 + $0x4] ss:$8 sps:$4 sm:$0xff]   ;;  %v1581_v16 = vld [vmem:[#allocation7 + $0x74] ss:$8 sps:$4 sm:$0xff]   ;;  %v1583_v17 = vld [vmem:[#allocation7 + $0x70] ss:$8 sps:$4 sm:$0xff]  }
  0x2c   :  { %433 = vmatpush1.bf16.msra.mxu0 %v1565_v3  ;;  %1540 = vmatpush1.bf16.msra.mxu1 %v1565_v3  ;;  %v1613_v15 = vld [vmem:[#allocation4 + $0x84] ss:$8 sps:$4 sm:$0xff]   ;;  %v1586_v19 = vld [vmem:[#allocation7 + $0x80] ss:$8 sps:$4 sm:$0xff]   ;;  %v1587_v20 = vld [vmem:[#allocation7 + $0x94] ss:$8 sps:$4 sm:$0xff]  }
  0x2d   :  { %434 = vmatprep.subr.bf16.mxu0 %v1566_v4  ;;  %1525 = vmatprep.subr.bf16.mxu1 %v1566_v4  ;;  %v1584_v18 = vld [vmem:[#allocation7 + $0x84] ss:$8 sps:$4 sm:$0xff]   ;;  %v1589_v21 = vld [vmem:[#allocation7 + $0x90] ss:$8 sps:$4 sm:$0xff]   ;;  %v1592_v23 = vld [vmem:[#allocation7 + $0xa0] ss:$8 sps:$4 sm:$0xff]  }
  0x2e   :  { %462 = vmatprep.mubr.bf16.mxu0 %v1610_v13  ;;  %542 = vmatprep.mubr.bf16.mxu1 %v1613_v15  ;;  %v1590_v22 = vld [vmem:[#allocation7 + $0xa4] ss:$8 sps:$4 sm:$0xff]   ;;  %v1593_v24 = vld [vmem:[#allocation7 + $0xb4] ss:$8 sps:$4 sm:$0xff]   ;;  %v1595_v25 = vld [vmem:[#allocation7 + $0xb0] ss:$8 sps:$4 sm:$0xff]  }
  0x2f   :  { %v1596_v26 = vld [vmem:[#allocation7 + $0xc4] ss:$8 sps:$4 sm:$0xff]   ;;  %v1598_v27 = vld [vmem:[#allocation7 + $0xc0] ss:$8 sps:$4 sm:$0xff]   ;;  %v1599_v28 = vld [vmem:[#allocation7 + $0xd4] ss:$8 sps:$4 sm:$0xff]  }
  0x30   :  { %435 = vmatpush1.bf16.msra.mxu0 %v1568_v5  ;;  %1541 = vmatpush1.bf16.msra.mxu1 %v1568_v5  ;;  %v1601_v29 = vld [vmem:[#allocation7 + $0xd0] ss:$8 sps:$4 sm:$0xff]   ;;  %v1602_v30 = vld [vmem:[#allocation7 + $0xe4] ss:$8 sps:$4 sm:$0xff]   ;;  %v1604_v31 = vld [vmem:[#allocation7 + $0xe0] ss:$8 sps:$4 sm:$0xff]  }
  0x31   :  { %436 = vmatprep.subr.bf16.mxu0 %v1569_v6  ;;  %1526 = vmatprep.subr.bf16.mxu1 %v1569_v6  ;;  %v1605_v32 = vld [vmem:[#allocation7 + $0xf4] ss:$8 sps:$4 sm:$0xff]   ;;  %v1607_v33 = vld [vmem:[#allocation7 + $0xf0] ss:$8 sps:$4 sm:$0xff]   ;;  %v1608_v34 = vld [vmem:[#allocation4] ss:$8 sps:$4 sm:$0xff]  }
  0x32   :  { %v1611_v35 = vld [vmem:[#allocation4 + $0x80] ss:$8 sps:$4 sm:$0xff]   ;;  %v1614_v36 = vld [vmem:[#allocation4 + $0x14] ss:$8 sps:$4 sm:$0xff]   ;;  %v1616_v38 = vld [vmem:[#allocation4 + $0x10] ss:$8 sps:$4 sm:$0xff]  }
  0x33   :  { %v1617_v37 = vld [vmem:[#allocation4 + $0x94] ss:$8 sps:$4 sm:$0xff]   ;;  %v1619_v39 = vld [vmem:[#allocation4 + $0x90] ss:$8 sps:$4 sm:$0xff]   ;;  %v1620_v40 = vld [vmem:[#allocation4 + $0x24] ss:$8 sps:$4 sm:$0xff]  }
  0x34   :  { %437 = vmatpush1.bf16.msra.mxu0 %v1571_v7  ;;  %1542 = vmatpush1.bf16.msra.mxu1 %v1571_v7  ;;  %v1623_v41 = vld [vmem:[#allocation4 + $0xa4] ss:$8 sps:$4 sm:$0xff]   ;;  %v1622_v42 = vld [vmem:[#allocation4 + $0x20] ss:$8 sps:$4 sm:$0xff]   ;;  %v1626_v44 = vld [vmem:[#allocation4 + $0x34] ss:$8 sps:$4 sm:$0xff]  }
  0x35   :  { %438 = vmatprep.subr.bf16.mxu0 %v1572_v8  ;;  %1527 = vmatprep.subr.bf16.mxu1 %v1572_v8  ;;  %v1625_v43 = vld [vmem:[#allocation4 + $0xa0] ss:$8 sps:$4 sm:$0xff]   ;;  %v1629_v45 = vld [vmem:[#allocation4 + $0xb4] ss:$8 sps:$4 sm:$0xff]   ;;  %v1628_v46 = vld [vmem:[#allocation4 + $0x30] ss:$8 sps:$4 sm:$0xff]  }
  0x36   :  { %v1631_v47 = vld [vmem:[#allocation4 + $0xb0] ss:$8 sps:$4 sm:$0xff]   ;;  %v1632_v48 = vld [vmem:[#allocation4 + $0x44] ss:$8 sps:$4 sm:$0xff]   ;;  %v1634_v50 = vld [vmem:[#allocation4 + $0x40] ss:$8 sps:$4 sm:$0xff]  }
  0x37   :  { %v1635_v49 = vld [vmem:[#allocation4 + $0xc4] ss:$8 sps:$4 sm:$0xff]   ;;  %v1637_v51 = vld [vmem:[#allocation4 + $0xc0] ss:$8 sps:$4 sm:$0xff]   ;;  %v1638_v52 = vld [vmem:[#allocation4 + $0x54] ss:$8 sps:$4 sm:$0xff]  }
  0x38   :  { %439 = vmatpush1.bf16.msra.mxu0 %v1574_v9  ;;  %1543 = vmatpush1.bf16.msra.mxu1 %v1574_v9  ;;  %v1641_v53 = vld [vmem:[#allocation4 + $0xd4] ss:$8 sps:$4 sm:$0xff]   ;;  %v1640_v54 = vld [vmem:[#allocation4 + $0x50] ss:$8 sps:$4 sm:$0xff]   ;;  %v1644_v56 = vld [vmem:[#allocation4 + $0x64] ss:$8 sps:$4 sm:$0xff]  }
  0x39   :  { %440 = vmatprep.subr.bf16.mxu0 %v1575_v10  ;;  %1528 = vmatprep.subr.bf16.mxu1 %v1575_v10  ;;  %v1643_v55 = vld [vmem:[#allocation4 + $0xd0] ss:$8 sps:$4 sm:$0xff]   ;;  %v1647_v57 = vld [vmem:[#allocation4 + $0xe4] ss:$8 sps:$4 sm:$0xff]   ;;  %v1646_v58 = vld [vmem:[#allocation4 + $0x60] ss:$8 sps:$4 sm:$0xff]  }
  0x3a   :  { %v1649_v59 = vld [vmem:[#allocation4 + $0xe0] ss:$8 sps:$4 sm:$0xff]   ;;  %v1650_v60 = vld [vmem:[#allocation4 + $0x74] ss:$8 sps:$4 sm:$0xff]   ;;  %v1652_v62 = vld [vmem:[#allocation4 + $0x70] ss:$8 sps:$4 sm:$0xff]  }
  0x3b   :  { %v1653_v61 = vld [vmem:[#allocation4 + $0xf4] ss:$8 sps:$4 sm:$0xff]   ;;  %v1655_v63 = vld [vmem:[#allocation4 + $0xf0] ss:$8 sps:$4 sm:$0xff]   ;;  %s1732_s0 = smov [#allocation9]  }
  0x3c   :  { %441 = vmatpush1.bf16.msra.mxu0 %v1577_v11  ;;  %1544 = vmatpush1.bf16.msra.mxu1 %v1577_v11  ;;  %s1378_s15 = sshll.u32 %s1732_s0, 4  ;;  %s1379_s15 = int_to_ptr.vmem [resolvable:$true] %s1378_s15 }
  0x3d   :  { %442 = vmatprep.subr.bf16.mxu0 %v1578_v12  ;;  %1529 = vmatprep.subr.bf16.mxu1 %v1578_v12  ;;  %s1700_s16 = scalar_lea.vmem %s1379_s15, 4096  ;;  %p1705_p3 = scmp.lt.s32.totalorder %s1379_s15, %s1379_s15 }
  0x3e   :  { %p1701_p2 = scmp.ne.s32.totalorder %s1379_s15, %s1700_s16  ;;  %p1706_p4 = scmp.lt.s32.totalorder %s1700_s16, %s1700_s16 }
  0x40   :  { %443 = vmatpush1.bf16.msra.mxu0 %v1580_v14  ;;  %1545 = vmatpush1.bf16.msra.mxu1 %v1580_v14  ;;  %p1707_p5 = por %p1706_p4, %p1705_p3 }
  0x41   :  { %444 = vmatprep.subr.bf16.mxu0 %v1581_v16  ;;  %1530 = vmatprep.subr.bf16.mxu1 %v1581_v16 }
  0x42   :  { %p1708_p6 = pnand %p1707_p5, %p1701_p2 }
  0x44   :  { %445 = vmatpush1.bf16.msra.mxu0 %v1583_v17  ;;  %1546 = vmatpush1.bf16.msra.mxu1 %v1583_v17 }
  0x45   :  { %446 = vmatprep.subr.bf16.mxu0 %v1584_v18  ;;  %1531 = vmatprep.subr.bf16.mxu1 %v1584_v18 }
  0x48   :  { %447 = vmatpush1.bf16.msra.mxu0 %v1586_v19  ;;  %1547 = vmatpush1.bf16.msra.mxu1 %v1586_v19 }
  0x49   :  { %448 = vmatprep.subr.bf16.mxu0 %v1587_v20  ;;  %1532 = vmatprep.subr.bf16.mxu1 %v1587_v20 }
  0x4c   :  { %449 = vmatpush1.bf16.msra.mxu0 %v1589_v21  ;;  %1548 = vmatpush1.bf16.msra.mxu1 %v1589_v21 }
  0x4d   :  { %450 = vmatprep.subr.bf16.mxu0 %v1590_v22  ;;  %1533 = vmatprep.subr.bf16.mxu1 %v1590_v22 }
  0x50   :  { %451 = vmatpush1.bf16.msra.mxu0 %v1592_v23  ;;  %1549 = vmatpush1.bf16.msra.mxu1 %v1592_v23 }
  0x51   :  { %452 = vmatprep.subr.bf16.mxu0 %v1593_v24  ;;  %1534 = vmatprep.subr.bf16.mxu1 %v1593_v24 }
  0x54   :  { %453 = vmatpush1.bf16.msra.mxu0 %v1595_v25  ;;  %1550 = vmatpush1.bf16.msra.mxu1 %v1595_v25 }
  0x55   :  { %454 = vmatprep.subr.bf16.mxu0 %v1596_v26  ;;  %1535 = vmatprep.subr.bf16.mxu1 %v1596_v26 }
  0x58   :  { %455 = vmatpush1.bf16.msra.mxu0 %v1598_v27  ;;  %1551 = vmatpush1.bf16.msra.mxu1 %v1598_v27 }
  0x59   :  { %456 = vmatprep.subr.bf16.mxu0 %v1599_v28  ;;  %1536 = vmatprep.subr.bf16.mxu1 %v1599_v28 }
  0x5c   :  { %457 = vmatpush1.bf16.msra.mxu0 %v1601_v29  ;;  %1552 = vmatpush1.bf16.msra.mxu1 %v1601_v29 }
  0x5d   :  { %458 = vmatprep.subr.bf16.mxu0 %v1602_v30  ;;  %1537 = vmatprep.subr.bf16.mxu1 %v1602_v30 }
  0x60   :  { %459 = vmatpush1.bf16.msra.mxu0 %v1604_v31  ;;  %1553 = vmatpush1.bf16.msra.mxu1 %v1604_v31 }
  0x61   :  { %460 = vmatprep.subr.bf16.mxu0 %v1605_v32  ;;  %1538 = vmatprep.subr.bf16.mxu1 %v1605_v32 }
  0x64   :  { %461 = vmatpush1.bf16.msra.mxu0 %v1607_v33  ;;  %1554 = vmatpush1.bf16.msra.mxu1 %v1607_v33 }
  0x67   :  { %463 = vmatmul.mubr.bf16.vlgmr.msra.gmra.mrb[0].mxu0 %v1608_v34  ;;  %543 = vmatmul.mubr.bf16.vlgmr.msra.gmra.mrb[0].mxu1 %v1611_v35 }
  0x68   :  { %472 = vmatprep.mubr.bf16.mxu0 %v1614_v36  ;;  %552 = vmatprep.mubr.bf16.mxu1 %v1617_v37 }
  0x6f   :  { %473 = vmatmul.mubr.bf16.gmra.mrb[4].mxu0 %v1616_v38  ;;  %553 = vmatmul.mubr.bf16.gmra.mrb[4].mxu1 %v1619_v39 }
  0x70   :  { %482 = vmatprep.mubr.bf16.mxu0 %v1620_v40  ;;  %562 = vmatprep.mubr.bf16.mxu1 %v1623_v41 }
  0x77   :  { %483 = vmatmul.mubr.bf16.gmra.mrb[8].mxu0 %v1622_v42  ;;  %563 = vmatmul.mubr.bf16.gmra.mrb[8].mxu1 %v1625_v43 }
  0x78   :  { %492 = vmatprep.mubr.bf16.mxu0 %v1626_v44  ;;  %572 = vmatprep.mubr.bf16.mxu1 %v1629_v45 }
  0x7f   :  { %493 = vmatmul.mubr.bf16.gmra.mrb[12].mxu0 %v1628_v46  ;;  %573 = vmatmul.mubr.bf16.gmra.mrb[12].mxu1 %v1631_v47 }
  0x80   :  { %502 = vmatprep.mubr.bf16.mxu0 %v1632_v48  ;;  %582 = vmatprep.mubr.bf16.mxu1 %v1635_v49 }
  0x87   :  { %503 = vmatmul.mubr.bf16.gmra.mrb[16].mxu0 %v1634_v50  ;;  %583 = vmatmul.mubr.bf16.gmra.mrb[16].mxu1 %v1637_v51 }
  0x88   :  { %512 = vmatprep.mubr.bf16.mxu0 %v1638_v52  ;;  %592 = vmatprep.mubr.bf16.mxu1 %v1641_v53 }
  0x8f   :  { %513 = vmatmul.mubr.bf16.gmra.mrb[20].mxu0 %v1640_v54  ;;  %593 = vmatmul.mubr.bf16.gmra.mrb[20].mxu1 %v1643_v55 }
  0x90   :  { %522 = vmatprep.mubr.bf16.mxu0 %v1644_v56  ;;  %602 = vmatprep.mubr.bf16.mxu1 %v1647_v57 }
  0x97   :  { %523 = vmatmul.mubr.bf16.gmra.mrb[24].mxu0 %v1646_v58  ;;  %603 = vmatmul.mubr.bf16.gmra.mrb[24].mxu1 %v1649_v59 }
  0x98   :  { %532 = vmatprep.mubr.bf16.mxu0 %v1650_v60  ;;  %612 = vmatprep.mubr.bf16.mxu1 %v1653_v61 }
  0x9f   :  { %533 = vmatmul.mubr.bf16.gmra.mrb[28].mxu0 %v1652_v62  ;;  %613 = vmatmul.mubr.bf16.gmra.mrb[28].mxu1 %v1655_v63 }
 0x13a   :  { %v464_v1 = vpop.f32.mrb[0].mxu0  ;;  %v544_v2 = vpop.f32.mrb[0].mxu1 }
 0x13b   :  { %v956_v3 = vmul.f32 %v1791_v0, %v464_v1  ;;  %v988_v4 = vmul.f32 %v1791_v0, %v544_v2  ;;  %v466_v5 = vpop.f32.mrb[1].mxu0  ;;  %v546_v6 = vpop.f32.mrb[1].mxu1 }
 0x13c   :  { %v957_v7 = vmul.f32 %v1791_v0, %v466_v5  ;;  %v989_v8 = vmul.f32 %v1791_v0, %v546_v6  ;;  %v468_v9 = vpop.f32.mrb[2].mxu0  ;;  %v548_v10 = vpop.f32.mrb[2].mxu1 }
 0x13d   :  { %v958_v11 = vmul.f32 %v1791_v0, %v468_v9  ;;  %v990_v12 = vmul.f32 %v1791_v0, %v548_v10  ;;  %v470_v13 = vpop.f32.mrb[3].mxu0  ;;  %v550_v14 = vpop.f32.mrb[3].mxu1 }
 0x13e   :  { %v1491_v15 = vpack.c.bf16 %v957_v7, %v956_v3  ;;  %v1507_v16 = vpack.c.bf16 %v989_v8, %v988_v4  ;;  %v959_v17 = vmul.f32 %v1791_v0, %v470_v13  ;;  %v991_v18 = vmul.f32 %v1791_v0, %v550_v14 }
 0x13f   :  { %v1244_v19 = vadd.f32 %v957_v7, %v956_v3  ;;  %v1292_v20 = vadd.f32 %v989_v8, %v988_v4 }
 0x140   :  { %1212 = vst [vmem:[#allocation9] sm:$0xff] %v1491_v15  ;;  %1228 = vst [vmem:[#allocation9 + $0x80] sm:$0xff] %v1507_v16  ;;  %v1492_v21 = vpack.c.bf16 %v959_v17, %v958_v11  ;;  %v1508_v22 = vpack.c.bf16 %v991_v18, %v990_v12  ;;  %v1295_v23 = vadd.f32 %v991_v18, %v990_v12 }
 0x141   :  { %v1247_v24 = vadd.f32 %v959_v17, %v958_v11  ;;  %1245 = vadd.xlane.f32.xlu0 %v1244_v19 }
 0x142   :  { %1213 = vst [vmem:[#allocation9 + $0x8] sm:$0xff] %v1492_v21  ;;  %1229 = vst [vmem:[#allocation9 + $0x88] sm:$0xff] %v1508_v22  ;;  %1296 = vadd.xlane.f32.xlu1 %v1295_v23  ;;  %v474_v25 = vpop.f32.mrb[4].mxu0  ;;  %v554_v26 = vpop.f32.mrb[4].mxu1 }
 0x143   :  { %v960_v27 = vmul.f32 %v1791_v0, %v474_v25  ;;  %v476_v28 = vpop.f32.mrb[5].mxu0  ;;  %v992_v29 = vmul.f32 %v1791_v0, %v554_v26  ;;  %v556_v30 = vpop.f32.mrb[5].mxu1 }
 0x144   :  { %v961_v31 = vmul.f32 %v1791_v0, %v476_v28  ;;  %v478_v32 = vpop.f32.mrb[6].mxu0  ;;  %v993_v33 = vmul.f32 %v1791_v0, %v556_v30  ;;  %v558_v34 = vpop.f32.mrb[6].mxu1 }
 0x145   :  { %1293 = vadd.xlane.f32.xlu0 %v1292_v20  ;;  %v962_v35 = vmul.f32 %v1791_v0, %v478_v32  ;;  %v480_v36 = vpop.f32.mrb[7].mxu0  ;;  %v994_v37 = vmul.f32 %v1791_v0, %v558_v34  ;;  %v560_v38 = vpop.f32.mrb[7].mxu1 }
 0x146   :  { %v1493_v39 = vpack.c.bf16 %v961_v31, %v960_v27  ;;  %v963_v40 = vmul.f32 %v1791_v0, %v480_v36  ;;  %v1509_v41 = vpack.c.bf16 %v993_v33, %v992_v29  ;;  %v995_v42 = vmul.f32 %v1791_v0, %v560_v38 }
 0x147   :  { %v1250_v43 = vadd.f32 %v961_v31, %v960_v27  ;;  %v1298_v44 = vadd.f32 %v993_v33, %v992_v29 }
 0x148   :  { %1214 = vst [vmem:[#allocation9 + $0x10] sm:$0xff] %v1493_v39  ;;  %v1494_v45 = vpack.c.bf16 %v963_v40, %v962_v35  ;;  %1230 = vst [vmem:[#allocation9 + $0x90] sm:$0xff] %v1509_v41  ;;  %v1510_v46 = vpack.c.bf16 %v995_v42, %v994_v37  ;;  %v1253_v47 = vadd.f32 %v963_v40, %v962_v35 }
 0x149   :  { %v1301_v48 = vadd.f32 %v995_v42, %v994_v37  ;;  %1248 = vadd.xlane.f32.xlu0 %v1247_v24  ;;  %1251 = vadd.xlane.f32.xlu1 %v1250_v43 }
 0x14a   :  { %1215 = vst [vmem:[#allocation9 + $0x18] sm:$0xff] %v1494_v45  ;;  %1231 = vst [vmem:[#allocation9 + $0x98] sm:$0xff] %v1510_v46  ;;  %v484_v49 = vpop.f32.mrb[8].mxu0  ;;  %v564_v50 = vpop.f32.mrb[8].mxu1 }
 0x14b   :  { %v964_v51 = vmul.f32 %v1791_v0, %v484_v49  ;;  %v486_v52 = vpop.f32.mrb[9].mxu0  ;;  %v996_v53 = vmul.f32 %v1791_v0, %v564_v50  ;;  %v566_v54 = vpop.f32.mrb[9].mxu1 }
 0x14c   :  { %v965_v55 = vmul.f32 %v1791_v0, %v486_v52  ;;  %v488_v56 = vpop.f32.mrb[10].mxu0  ;;  %v997_v57 = vmul.f32 %v1791_v0, %v566_v54  ;;  %v568_v58 = vpop.f32.mrb[10].mxu1 }
 0x14d   :  { %1254 = vadd.xlane.f32.xlu1 %v1253_v47  ;;  %v966_v59 = vmul.f32 %v1791_v0, %v488_v56  ;;  %1299 = vadd.xlane.f32.xlu0 %v1298_v44  ;;  %v490_v60 = vpop.f32.mrb[11].mxu0  ;;  %v998_v61 = vmul.f32 %v1791_v0, %v568_v58  ;;  %v570_v62 = vpop.f32.mrb[11].mxu1 }
 0x14e   :  { %v1495_v63 = vpack.c.bf16 %v965_v55, %v964_v51  ;;  %v967_v1 = vmul.f32 %v1791_v0, %v490_v60  ;;  %v1511_v2 = vpack.c.bf16 %v997_v57, %v996_v53  ;;  %v999_v3 = vmul.f32 %v1791_v0, %v570_v62 }
 0x14f   :  { %v1256_v4 = vadd.f32 %v965_v55, %v964_v51  ;;  %v1304_v5 = vadd.f32 %v997_v57, %v996_v53 }
 0x150   :  { %1216 = vst [vmem:[#allocation9 + $0x20] sm:$0xff] %v1495_v63  ;;  %v1496_v6 = vpack.c.bf16 %v967_v1, %v966_v59  ;;  %1232 = vst [vmem:[#allocation9 + $0xa0] sm:$0xff] %v1511_v2  ;;  %v1512_v7 = vpack.c.bf16 %v999_v3, %v998_v61  ;;  %v1259_v8 = vadd.f32 %v967_v1, %v966_v59 }
 0x151   :  { %v1307_v9 = vadd.f32 %v999_v3, %v998_v61  ;;  %1302 = vadd.xlane.f32.xlu1 %v1301_v48  ;;  %1257 = vadd.xlane.f32.xlu0 %v1256_v4 }
 0x152   :  { %1217 = vst [vmem:[#allocation9 + $0x28] sm:$0xff] %v1496_v6  ;;  %1233 = vst [vmem:[#allocation9 + $0xa8] sm:$0xff] %v1512_v7  ;;  %v494_v10 = vpop.f32.mrb[12].mxu0  ;;  %v574_v11 = vpop.f32.mrb[12].mxu1 }
 0x153   :  { %v968_v12 = vmul.f32 %v1791_v0, %v494_v10  ;;  %v496_v13 = vpop.f32.mrb[13].mxu0  ;;  %v1000_v14 = vmul.f32 %v1791_v0, %v574_v11  ;;  %v576_v15 = vpop.f32.mrb[13].mxu1 }
 0x154   :  { %v969_v16 = vmul.f32 %v1791_v0, %v496_v13  ;;  %v498_v17 = vpop.f32.mrb[14].mxu0  ;;  %v1001_v18 = vmul.f32 %v1791_v0, %v576_v15  ;;  %v578_v19 = vpop.f32.mrb[14].mxu1 }
 0x155   :  { %1260 = vadd.xlane.f32.xlu1 %v1259_v8  ;;  %v970_v20 = vmul.f32 %v1791_v0, %v498_v17  ;;  %1305 = vadd.xlane.f32.xlu0 %v1304_v5  ;;  %v500_v21 = vpop.f32.mrb[15].mxu0  ;;  %v1002_v22 = vmul.f32 %v1791_v0, %v578_v19  ;;  %v580_v23 = vpop.f32.mrb[15].mxu1 }
 0x156   :  { %v1497_v24 = vpack.c.bf16 %v969_v16, %v968_v12  ;;  %v971_v25 = vmul.f32 %v1791_v0, %v500_v21  ;;  %v1513_v26 = vpack.c.bf16 %v1001_v18, %v1000_v14  ;;  %v1003_v27 = vmul.f32 %v1791_v0, %v580_v23 }
 0x157   :  { %v1262_v28 = vadd.f32 %v969_v16, %v968_v12  ;;  %v1310_v29 = vadd.f32 %v1001_v18, %v1000_v14 }
 0x158   :  { %1218 = vst [vmem:[#allocation9 + $0x30] sm:$0xff] %v1497_v24  ;;  %v1498_v30 = vpack.c.bf16 %v971_v25, %v970_v20  ;;  %1234 = vst [vmem:[#allocation9 + $0xb0] sm:$0xff] %v1513_v26  ;;  %v1514_v31 = vpack.c.bf16 %v1003_v27, %v1002_v22  ;;  %v1265_v32 = vadd.f32 %v971_v25, %v970_v20 }
 0x159   :  { %v1313_v33 = vadd.f32 %v1003_v27, %v1002_v22  ;;  %1308 = vadd.xlane.f32.xlu1 %v1307_v9  ;;  %1263 = vadd.xlane.f32.xlu0 %v1262_v28 }
 0x15a   :  { %1219 = vst [vmem:[#allocation9 + $0x38] sm:$0xff] %v1498_v30  ;;  %1235 = vst [vmem:[#allocation9 + $0xb8] sm:$0xff] %v1514_v31  ;;  %v504_v34 = vpop.f32.mrb[16].mxu0  ;;  %v584_v35 = vpop.f32.mrb[16].mxu1 }
 0x15b   :  { %v972_v36 = vmul.f32 %v1791_v0, %v504_v34  ;;  %v506_v37 = vpop.f32.mrb[17].mxu0  ;;  %v1004_v38 = vmul.f32 %v1791_v0, %v584_v35  ;;  %v586_v39 = vpop.f32.mrb[17].mxu1 }
 0x15c   :  { %v973_v40 = vmul.f32 %v1791_v0, %v506_v37  ;;  %v508_v41 = vpop.f32.mrb[18].mxu0  ;;  %v1005_v42 = vmul.f32 %v1791_v0, %v586_v39  ;;  %v588_v43 = vpop.f32.mrb[18].mxu1 }
 0x15d   :  { %1266 = vadd.xlane.f32.xlu1 %v1265_v32  ;;  %v974_v44 = vmul.f32 %v1791_v0, %v508_v41  ;;  %1311 = vadd.xlane.f32.xlu0 %v1310_v29  ;;  %v510_v45 = vpop.f32.mrb[19].mxu0  ;;  %v1006_v46 = vmul.f32 %v1791_v0, %v588_v43  ;;  %v590_v47 = vpop.f32.mrb[19].mxu1 }
 0x15e   :  { %v1499_v48 = vpack.c.bf16 %v973_v40, %v972_v36  ;;  %v975_v49 = vmul.f32 %v1791_v0, %v510_v45  ;;  %v1515_v50 = vpack.c.bf16 %v1005_v42, %v1004_v38  ;;  %v1007_v51 = vmul.f32 %v1791_v0, %v590_v47 }
 0x15f   :  { %v1268_v52 = vadd.f32 %v973_v40, %v972_v36  ;;  %v1316_v53 = vadd.f32 %v1005_v42, %v1004_v38 }
 0x160   :  { %1220 = vst [vmem:[#allocation9 + $0x40] sm:$0xff] %v1499_v48  ;;  %v1500_v54 = vpack.c.bf16 %v975_v49, %v974_v44  ;;  %1236 = vst [vmem:[#allocation9 + $0xc0] sm:$0xff] %v1515_v50  ;;  %v1516_v55 = vpack.c.bf16 %v1007_v51, %v1006_v46  ;;  %v1271_v56 = vadd.f32 %v975_v49, %v974_v44 }
 0x161   :  { %v1319_v57 = vadd.f32 %v1007_v51, %v1006_v46  ;;  %1314 = vadd.xlane.f32.xlu1 %v1313_v33  ;;  %1269 = vadd.xlane.f32.xlu0 %v1268_v52 }
 0x162   :  { %1221 = vst [vmem:[#allocation9 + $0x48] sm:$0xff] %v1500_v54  ;;  %1237 = vst [vmem:[#allocation9 + $0xc8] sm:$0xff] %v1516_v55  ;;  %v514_v58 = vpop.f32.mrb[20].mxu0  ;;  %v594_v59 = vpop.f32.mrb[20].mxu1 }
 0x163   :  { %v976_v60 = vmul.f32 %v1791_v0, %v514_v58  ;;  %v516_v61 = vpop.f32.mrb[21].mxu0  ;;  %v1008_v62 = vmul.f32 %v1791_v0, %v594_v59  ;;  %v596_v63 = vpop.f32.mrb[21].mxu1 }
 0x164   :  { %v977_v1 = vmul.f32 %v1791_v0, %v516_v61  ;;  %v518_v2 = vpop.f32.mrb[22].mxu0  ;;  %v1009_v3 = vmul.f32 %v1791_v0, %v596_v63  ;;  %v598_v4 = vpop.f32.mrb[22].mxu1 }
 0x165   :  { %1272 = vadd.xlane.f32.xlu1 %v1271_v56  ;;  %v978_v5 = vmul.f32 %v1791_v0, %v518_v2  ;;  %1317 = vadd.xlane.f32.xlu0 %v1316_v53  ;;  %v520_v6 = vpop.f32.mrb[23].mxu0  ;;  %v1010_v7 = vmul.f32 %v1791_v0, %v598_v4  ;;  %v600_v8 = vpop.f32.mrb[23].mxu1 }
 0x166   :  { %v1501_v9 = vpack.c.bf16 %v977_v1, %v976_v60  ;;  %v979_v10 = vmul.f32 %v1791_v0, %v520_v6  ;;  %v1517_v11 = vpack.c.bf16 %v1009_v3, %v1008_v62  ;;  %v1011_v12 = vmul.f32 %v1791_v0, %v600_v8 }
 0x167   :  { %v1274_v13 = vadd.f32 %v977_v1, %v976_v60  ;;  %v1322_v14 = vadd.f32 %v1009_v3, %v1008_v62 }
 0x168   :  { %1222 = vst [vmem:[#allocation9 + $0x50] sm:$0xff] %v1501_v9  ;;  %v1502_v15 = vpack.c.bf16 %v979_v10, %v978_v5  ;;  %1238 = vst [vmem:[#allocation9 + $0xd0] sm:$0xff] %v1517_v11  ;;  %v1518_v16 = vpack.c.bf16 %v1011_v12, %v1010_v7  ;;  %v1277_v17 = vadd.f32 %v979_v10, %v978_v5 }
 0x169   :  { %v1325_v18 = vadd.f32 %v1011_v12, %v1010_v7  ;;  %1320 = vadd.xlane.f32.xlu1 %v1319_v57  ;;  %1275 = vadd.xlane.f32.xlu0 %v1274_v13 }
 0x16a   :  { %1223 = vst [vmem:[#allocation9 + $0x58] sm:$0xff] %v1502_v15  ;;  %1239 = vst [vmem:[#allocation9 + $0xd8] sm:$0xff] %v1518_v16  ;;  %v524_v19 = vpop.f32.mrb[24].mxu0  ;;  %v604_v20 = vpop.f32.mrb[24].mxu1 }
 0x16b   :  { %v980_v21 = vmul.f32 %v1791_v0, %v524_v19  ;;  %v526_v22 = vpop.f32.mrb[25].mxu0  ;;  %v1012_v23 = vmul.f32 %v1791_v0, %v604_v20  ;;  %v606_v24 = vpop.f32.mrb[25].mxu1 }
 0x16c   :  { %v981_v25 = vmul.f32 %v1791_v0, %v526_v22  ;;  %v528_v26 = vpop.f32.mrb[26].mxu0  ;;  %v1013_v27 = vmul.f32 %v1791_v0, %v606_v24  ;;  %v608_v28 = vpop.f32.mrb[26].mxu1 }
 0x16d   :  { %1278 = vadd.xlane.f32.xlu1 %v1277_v17  ;;  %v982_v29 = vmul.f32 %v1791_v0, %v528_v26  ;;  %1323 = vadd.xlane.f32.xlu0 %v1322_v14  ;;  %v530_v30 = vpop.f32.mrb[27].mxu0  ;;  %v1014_v31 = vmul.f32 %v1791_v0, %v608_v28  ;;  %v610_v32 = vpop.f32.mrb[27].mxu1 }
 0x16e   :  { %v1503_v33 = vpack.c.bf16 %v981_v25, %v980_v21  ;;  %v983_v34 = vmul.f32 %v1791_v0, %v530_v30  ;;  %v1519_v35 = vpack.c.bf16 %v1013_v27, %v1012_v23  ;;  %v1015_v36 = vmul.f32 %v1791_v0, %v610_v32 }
 0x16f   :  { %v1280_v37 = vadd.f32 %v981_v25, %v980_v21  ;;  %v1328_v38 = vadd.f32 %v1013_v27, %v1012_v23 }
 0x170   :  { %1224 = vst [vmem:[#allocation9 + $0x60] sm:$0xff] %v1503_v33  ;;  %v1504_v39 = vpack.c.bf16 %v983_v34, %v982_v29  ;;  %1240 = vst [vmem:[#allocation9 + $0xe0] sm:$0xff] %v1519_v35  ;;  %v1520_v40 = vpack.c.bf16 %v1015_v36, %v1014_v31  ;;  %v1283_v41 = vadd.f32 %v983_v34, %v982_v29 }
 0x171   :  { %v1331_v42 = vadd.f32 %v1015_v36, %v1014_v31  ;;  %1326 = vadd.xlane.f32.xlu1 %v1325_v18  ;;  %1281 = vadd.xlane.f32.xlu0 %v1280_v37 }
 0x172   :  { %1225 = vst [vmem:[#allocation9 + $0x68] sm:$0xff] %v1504_v39  ;;  %1241 = vst [vmem:[#allocation9 + $0xe8] sm:$0xff] %v1520_v40  ;;  %v534_v43 = vpop.f32.mrb[28].mxu0  ;;  %v614_v44 = vpop.f32.mrb[28].mxu1 }
 0x173   :  { %v984_v45 = vmul.f32 %v1791_v0, %v534_v43  ;;  %v536_v46 = vpop.f32.mrb[29].mxu0  ;;  %v1016_v47 = vmul.f32 %v1791_v0, %v614_v44  ;;  %v616_v48 = vpop.f32.mrb[29].mxu1 }
 0x174   :  { %v985_v49 = vmul.f32 %v1791_v0, %v536_v46  ;;  %v538_v50 = vpop.f32.mrb[30].mxu0  ;;  %v1017_v51 = vmul.f32 %v1791_v0, %v616_v48  ;;  %v618_v52 = vpop.f32.mrb[30].mxu1 }
 0x175   :  { %1284 = vadd.xlane.f32.xlu1 %v1283_v41  ;;  %v986_v53 = vmul.f32 %v1791_v0, %v538_v50  ;;  %1329 = vadd.xlane.f32.xlu0 %v1328_v38  ;;  %v540_v54 = vpop.f32.mrb[31].mxu0  ;;  %v1018_v55 = vmul.f32 %v1791_v0, %v618_v52  ;;  %v620_v56 = vpop.f32.mrb[31].mxu1 }
 0x176   :  { %v1505_v57 = vpack.c.bf16 %v985_v49, %v984_v45  ;;  %v987_v58 = vmul.f32 %v1791_v0, %v540_v54  ;;  %v1521_v59 = vpack.c.bf16 %v1017_v51, %v1016_v47  ;;  %v1019_v60 = vmul.f32 %v1791_v0, %v620_v56 }
 0x177   :  { %v1286_v61 = vadd.f32 %v985_v49, %v984_v45  ;;  %v1334_v62 = vadd.f32 %v1017_v51, %v1016_v47 }
 0x178   :  { %1226 = vst [vmem:[#allocation9 + $0x70] sm:$0xff] %v1505_v57  ;;  %v1506_v63 = vpack.c.bf16 %v987_v58, %v986_v53  ;;  %1242 = vst [vmem:[#allocation9 + $0xf0] sm:$0xff] %v1521_v59  ;;  %v1522_v1 = vpack.c.bf16 %v1019_v60, %v1018_v55  ;;  %v1289_v2 = vadd.f32 %v987_v58, %v986_v53 }
 0x179   :  { %v1337_v3 = vadd.f32 %v1019_v60, %v1018_v55  ;;  %1332 = vadd.xlane.f32.xlu1 %v1331_v42  ;;  %1287 = vadd.xlane.f32.xlu0 %v1286_v61 }
 0x17a   :  { %1227 = vst [vmem:[#allocation9 + $0x78] sm:$0xff] %v1506_v63  ;;  %1243 = vst [vmem:[#allocation9 + $0xf8] sm:$0xff] %v1522_v1 }
 0x17d   :  { %1290 = vadd.xlane.f32.xlu1 %v1289_v2  ;;  %1335 = vadd.xlane.f32.xlu0 %v1334_v62 }
 0x181   :  { %1338 = vadd.xlane.f32.xlu1 %v1337_v3 }
 0x182   :  { %1711 = shalt.err (!%p1708_p6)
}
 0x183   :  { %s1712_s19 = scalar_lea.hbm %s2003_s3, 4096 }
 0x184   :  { %p1713_p7 = scmp.ne.s32.totalorder %s2003_s3, %s1712_s19  ;;  %p1716_p8 = scmp.lt.u32.totalorder %s1712_s19, %s2003_s3 }
 0x186   :  { %p1718_p9 = pnand %p1716_p8, %p1713_p7 }
 0x188   :  { %1721 = shalt.err (!%p1718_p9)
}
 0x189   :  { %1384 = dma.vmem_to_hbm [thread:$0]  %s1379_s15, 4096, %s2003_s3, [#allocation6], %s1729_s25, %s1729_s25, %s1730_s26   ;;  %vm1340_vm0 = vcmask 7168  }
 0x1ce   :  { %v1246_v0 = vpop.xlane.xlu0 %1245 }
 0x1cf   :  { %1341 = vst.msk [vmem:[%s2004_s4] sm:$0xff] %vm1340_vm0, %v1246_v0  ;;  %v1297_v4 = vpop.xlane.xlu1 %1296 }
 0x1d0   :  { %1358 = vst.msk [vmem:[%s2004_s4 + $0x88] sm:$0xff] %vm1340_vm0, %v1297_v4 }
 0x1d2   :  { %v1294_v5 = vpop.xlane.xlu0 %1293 }
 0x1d3   :  { %1357 = vst.msk [vmem:[%s2004_s4 + $0x80] sm:$0xff] %vm1340_vm0, %v1294_v5 }
 0x1d6   :  { %v1249_v6 = vpop.xlane.xlu0 %1248  ;;  %v1252_v7 = vpop.xlane.xlu1 %1251 }
 0x1d7   :  { %1342 = vst.msk [vmem:[%s2004_s4 + $0x8] sm:$0xff] %vm1340_vm0, %v1249_v6  ;;  %1343 = vst.msk [vmem:[%s2004_s4 + $0x10] sm:$0xff] %vm1340_vm0, %v1252_v7 }
 0x1da   :  { %v1255_v8 = vpop.xlane.xlu1 %1254  ;;  %v1300_v9 = vpop.xlane.xlu0 %1299 }
 0x1db   :  { %1344 = vst.msk [vmem:[%s2004_s4 + $0x18] sm:$0xff] %vm1340_vm0, %v1255_v8  ;;  %1359 = vst.msk [vmem:[%s2004_s4 + $0x90] sm:$0xff] %vm1340_vm0, %v1300_v9 }
 0x1de   :  { %v1303_v10 = vpop.xlane.xlu1 %1302  ;;  %v1258_v11 = vpop.xlane.xlu0 %1257 }
 0x1df   :  { %1360 = vst.msk [vmem:[%s2004_s4 + $0x98] sm:$0xff] %vm1340_vm0, %v1303_v10  ;;  %1345 = vst.msk [vmem:[%s2004_s4 + $0x20] sm:$0xff] %vm1340_vm0, %v1258_v11 }
 0x1e2   :  { %v1261_v12 = vpop.xlane.xlu1 %1260  ;;  %v1306_v13 = vpop.xlane.xlu0 %1305 }
 0x1e3   :  { %1346 = vst.msk [vmem:[%s2004_s4 + $0x28] sm:$0xff] %vm1340_vm0, %v1261_v12  ;;  %1361 = vst.msk [vmem:[%s2004_s4 + $0xa0] sm:$0xff] %vm1340_vm0, %v1306_v13 }
 0x1e6   :  { %v1309_v14 = vpop.xlane.xlu1 %1308  ;;  %v1264_v15 = vpop.xlane.xlu0 %1263 }
 0x1e7   :  { %1362 = vst.msk [vmem:[%s2004_s4 + $0xa8] sm:$0xff] %vm1340_vm0, %v1309_v14  ;;  %1347 = vst.msk [vmem:[%s2004_s4 + $0x30] sm:$0xff] %vm1340_vm0, %v1264_v15 }
 0x1ea   :  { %v1267_v16 = vpop.xlane.xlu1 %1266  ;;  %v1312_v17 = vpop.xlane.xlu0 %1311 }
 0x1eb   :  { %1348 = vst.msk [vmem:[%s2004_s4 + $0x38] sm:$0xff] %vm1340_vm0, %v1267_v16  ;;  %1363 = vst.msk [vmem:[%s2004_s4 + $0xb0] sm:$0xff] %vm1340_vm0, %v1312_v17 }
 0x1ee   :  { %v1315_v18 = vpop.xlane.xlu1 %1314  ;;  %v1270_v19 = vpop.xlane.xlu0 %1269 }
 0x1ef   :  { %1364 = vst.msk [vmem:[%s2004_s4 + $0xb8] sm:$0xff] %vm1340_vm0, %v1315_v18  ;;  %1349 = vst.msk [vmem:[%s2004_s4 + $0x40] sm:$0xff] %vm1340_vm0, %v1270_v19 }
 0x1f2   :  { %v1273_v20 = vpop.xlane.xlu1 %1272  ;;  %v1318_v21 = vpop.xlane.xlu0 %1317 }
 0x1f3   :  { %1350 = vst.msk [vmem:[%s2004_s4 + $0x48] sm:$0xff] %vm1340_vm0, %v1273_v20  ;;  %1365 = vst.msk [vmem:[%s2004_s4 + $0xc0] sm:$0xff] %vm1340_vm0, %v1318_v21 }
 0x1f6   :  { %v1321_v22 = vpop.xlane.xlu1 %1320  ;;  %v1276_v23 = vpop.xlane.xlu0 %1275 }
 0x1f7   :  { %1366 = vst.msk [vmem:[%s2004_s4 + $0xc8] sm:$0xff] %vm1340_vm0, %v1321_v22  ;;  %1351 = vst.msk [vmem:[%s2004_s4 + $0x50] sm:$0xff] %vm1340_vm0, %v1276_v23 }
 0x1fa   :  { %v1279_v24 = vpop.xlane.xlu1 %1278  ;;  %v1324_v25 = vpop.xlane.xlu0 %1323 }
 0x1fb   :  { %1352 = vst.msk [vmem:[%s2004_s4 + $0x58] sm:$0xff] %vm1340_vm0, %v1279_v24  ;;  %1367 = vst.msk [vmem:[%s2004_s4 + $0xd0] sm:$0xff] %vm1340_vm0, %v1324_v25 }
 0x1fe   :  { %v1327_v26 = vpop.xlane.xlu1 %1326  ;;  %v1282_v27 = vpop.xlane.xlu0 %1281 }
 0x1ff   :  { %1368 = vst.msk [vmem:[%s2004_s4 + $0xd8] sm:$0xff] %vm1340_vm0, %v1327_v26  ;;  %1353 = vst.msk [vmem:[%s2004_s4 + $0x60] sm:$0xff] %vm1340_vm0, %v1282_v27 }
 0x202   :  { %v1285_v28 = vpop.xlane.xlu1 %1284  ;;  %v1330_v29 = vpop.xlane.xlu0 %1329 }
 0x203   :  { %1354 = vst.msk [vmem:[%s2004_s4 + $0x68] sm:$0xff] %vm1340_vm0, %v1285_v28  ;;  %1369 = vst.msk [vmem:[%s2004_s4 + $0xe0] sm:$0xff] %vm1340_vm0, %v1330_v29 }
 0x206   :  { %v1333_v30 = vpop.xlane.xlu1 %1332  ;;  %v1288_v31 = vpop.xlane.xlu0 %1287 }
 0x207   :  { %1370 = vst.msk [vmem:[%s2004_s4 + $0xe8] sm:$0xff] %vm1340_vm0, %v1333_v30  ;;  %1355 = vst.msk [vmem:[%s2004_s4 + $0x70] sm:$0xff] %vm1340_vm0, %v1288_v31 }
 0x20a   :  { %v1291_v32 = vpop.xlane.xlu1 %1290  ;;  %v1336_v33 = vpop.xlane.xlu0 %1335 }
 0x20b   :  { %1356 = vst.msk [vmem:[%s2004_s4 + $0x78] sm:$0xff] %vm1340_vm0, %v1291_v32  ;;  %1371 = vst.msk [vmem:[%s2004_s4 + $0xf0] sm:$0xff] %vm1340_vm0, %v1336_v33 }
 0x20e   :  { %v1339_v34 = vpop.xlane.xlu1 %1338 }
 0x20f   :  { %1372 = vst.msk [vmem:[%s2004_s4 + $0xf8] sm:$0xff] %vm1340_vm0, %v1339_v34 }
 0x210   :  { %1726 = dma.done.wait [#allocation6], 4096  }
 0x211   :  { %1727 = vsyncadd [#allocation6], 4294963200 }
 0x212   :  { %1392 = vsyncpa [#allocation5], 1 }
 0x213   :  { %1393 = vsyncpa [#allocation8], 1 }
 0x214   :  { %1394 = vsyncpa [#allocation6], 1 }

</bundles_post_ra>
